<compile_context>
chip_gen: v6e
topology: v6e:2x2x1
jax: 0.10.0
libtpu: 0.0.40
codegen_flags: <defaults>
</compile_context>

<pallas_src>
import functools

import jax
import jax.numpy as jnp
from jax import lax
from jax.experimental import pallas as pl
from jax.experimental.pallas import tpu as pltpu


def _round_up(n, m):
    return (n + m - 1) // m * m


def _pad2d(x, rows, cols):
    return jnp.pad(x, ((0, rows - x.shape[0]), (0, cols - x.shape[1])))


# ------------------------------- kernels -------------------------------------

def _tower_embed(ids_ref, num_ref, w1_ref, b1_ref, w2_ref, b2_ref):
    """One tower MLP on the fused [one-hot | numerical] input.

    ids_ref : [M, 1]      int32  (padded rows hold -1 -> all-zero one-hot row)
    num_ref : [M, K_pad]  f32    (numericals already placed at cols [V, V+num))
    w1_ref  : [K_pad, H_pad] f32 (rows [0,V) = embed_table @ W1_cat pre-fused
                                  in the wrapper; rows [V, V+num) = W1_num)
    """
    m, k_pad = num_ref.shape
    col = lax.broadcasted_iota(jnp.int32, (m, k_pad), 1)
    onehot = (col == ids_ref[...]).astype(jnp.float32)        # [M, K_pad]
    x = onehot + num_ref[...]        # disjoint nonzero columns -> exact concat
    h = jnp.dot(x, w1_ref[...], preferred_element_type=jnp.float32) + b1_ref[...]
    h = jnp.maximum(h, 0.0)
    return jnp.dot(h, w2_ref[...], preferred_element_type=jnp.float32) + b2_ref[...]


def _l2_normalize(emb, eps):
    # F.normalize(p=2, dim=1): x / max(||x||, eps)
    norm = jnp.sqrt(jnp.sum(emb * emb, axis=1, keepdims=True))
    return emb / jnp.maximum(norm, eps)


def _article_kernel(ids_ref, num_ref, w1_ref, b1_ref, w2_ref, b2_ref, *out_refs,
                    normalize, eps, return_emb):
    emb = _tower_embed(ids_ref, num_ref, w1_ref, b1_ref, w2_ref, b2_ref)
    sim = _l2_normalize(emb, eps) if normalize else emb
    # One-time in-kernel transpose so the customer-side sims matmul is a plain
    # [M,E] @ [E,Ba] MXU feed (no per-tile relayout / vxpose of the RHS).
    out_refs[0][...] = sim.T.astype(out_refs[0].dtype)        # [E_pad, Ba_pad]
    if return_emb:
        out_refs[1][...] = emb.astype(out_refs[1].dtype)      # [Ba_pad, E_pad]


def _customer_kernel(ids_ref, num_ref, w1_ref, b1_ref, w2_ref, b2_ref,
                     a_simT_ref, *out_refs,
                     normalize, eps, inv_temperature, return_emb):
    emb = _tower_embed(ids_ref, num_ref, w1_ref, b1_ref, w2_ref, b2_ref)
    sim = _l2_normalize(emb, eps) if normalize else emb
    sims = jnp.dot(sim, a_simT_ref[...], preferred_element_type=jnp.float32)
    out_refs[0][...] = (sims * inv_temperature).astype(out_refs[0].dtype)
    if return_emb:
        out_refs[1][...] = emb.astype(out_refs[1].dtype)


# --------------------------- wrapper / model glue -----------------------------

def init_tower_params(key, vocab_size, cat_embed_dim, num_numerical, hidden_dim,
                      embedding_dim):
    k1, k2, k3, k4, k5 = jax.random.split(key, 5)
    d_in = cat_embed_dim + num_numerical
    return {
        "embed_table": jax.random.normal(k1, (vocab_size, cat_embed_dim),
                                         jnp.float32) * 0.1,
        "w1": jax.random.normal(k2, (d_in, hidden_dim), jnp.float32) * 0.1,
        "b1": jax.random.normal(k3, (1, hidden_dim), jnp.float32) * 0.01,
        "w2": jax.random.normal(k4, (hidden_dim, embedding_dim), jnp.float32) * 0.1,
        "b2": jax.random.normal(k5, (1, embedding_dim), jnp.float32) * 0.01,
    }


def _prep_tower_inputs(params, cat_ids, numerical, b_pad):
    """Zero-pad one tower's inputs and pre-fuse the embedding into W1."""
    vocab, cat_dim = params["embed_table"].shape
    b, num_dim = numerical.shape
    hidden = params["w1"].shape[1]
    emb = params["w2"].shape[1]

    k_pad = _round_up(vocab + num_dim, 128)   # fused [one-hot | numerical] width
    h_pad = _round_up(hidden, 128)
    e_pad = _round_up(emb, 128)

    # categorical ids -> [b_pad, 1]; padded rows get -1 (out-of-range sentinel)
    # so their one-hot rows are all-zero (dead padded rows).
    ids = cat_ids.reshape(-1, 1).astype(jnp.int32)
    ids = jnp.pad(ids, ((0, b_pad - b), (0, 0)), constant_values=-1)

    # numericals placed at columns [vocab, vocab+num_dim) of the fused input
    num = jnp.zeros((b_pad, k_pad), jnp.float32)
    num = num.at[:b, vocab:vocab + num_dim].set(numerical.astype(jnp.float32))

    # Pre-fused first layer:
    #   [one-hot | numerical] @ W1f == embed_table[id] @ W1_cat + num @ W1_num
    fused_cat = jnp.dot(params["embed_table"], params["w1"][:cat_dim],
                        precision=lax.Precision.HIGHEST)       # [vocab, hidden]
    w1f = jnp.zeros((k_pad, h_pad), jnp.float32)
    w1f = w1f.at[:vocab, :hidden].set(fused_cat)
    w1f = w1f.at[vocab:vocab + num_dim, :hidden].set(params["w1"][cat_dim:])

    b1 = _pad2d(params["b1"], 1, h_pad)
    w2 = _pad2d(params["w2"], h_pad, e_pad)
    b2 = _pad2d(params["b2"], 1, e_pad)
    return (ids, num, w1f, b1, w2, b2), (k_pad, h_pad, e_pad)


def two_tower_forward(cust_params, art_params, customer_features, article_features,
                      temperature=1.0, similarity_metric="cosine",
                      return_embeddings=False):
    if similarity_metric not in ("cosine", "dot"):
        raise ValueError(f"Unsupported similarity metric: {similarity_metric}")
    normalize = similarity_metric == "cosine"
    eps = 1e-12                       # F.normalize default eps

    emb_dim = cust_params["w2"].shape[1]
    if art_params["w2"].shape[1] != emb_dim:
        raise ValueError("Customer tower output dim must match article tower output dim")

    bc = customer_features["categorical"].shape[0]
    ba = article_features["categorical"].shape[0]

    # Customer batch tiled along a 'parallel' grid axis (megacore + DMA/compute
    # pipelining); 256-row tiles fill the 2x256^2 MXU on v6e/v7x.
    tile_m = min(256, _round_up(bc, 8))
    bc_pad = _round_up(_round_up(bc, 8), tile_m)
    # Article batch sits on the sims lane axis -> multiple of 128 (lane-dense).
    ba_pad = _round_up(ba, 128)

    cust_in, (c_k, c_h, e_pad) = _prep_tower_inputs(
        cust_params, customer_features["categorical"],
        customer_features["numerical"], bc_pad)
    art_in, (a_k, a_h, a_e) = _prep_tower_inputs(
        art_params, article_features["categorical"],
        article_features["numerical"], ba_pad)
    assert a_e == e_pad, "tower embedding dims must match"

    vmem_bytes = 32 * 1024 * 1024     # fits v7x 64 MiB physical and v5e scoped VMEM

    # ---------------- article tower: computed ONCE (not per customer tile) ----
    art_full = [pl.BlockSpec(a.shape, lambda i: (0, 0)) for a in art_in]
    art_out_shape = [jax.ShapeDtypeStruct((e_pad, ba_pad), jnp.float32)]   # a_simT
    art_out_specs = [pl.BlockSpec((e_pad, ba_pad), lambda i: (0, 0))]
    if return_embeddings:
        art_out_shape.append(jax.ShapeDtypeStruct((ba_pad, e_pad), jnp.float32))
        art_out_specs.append(pl.BlockSpec((ba_pad, e_pad), lambda i: (0, 0)))

    art_out = pl.pallas_call(
        functools.partial(_article_kernel, normalize=normalize, eps=eps,
                          return_emb=return_embeddings),
        out_shape=tuple(art_out_shape),
        grid=(1,),
        in_specs=art_full,
        out_specs=tuple(art_out_specs),
        compiler_params=pltpu.CompilerParams(
            dimension_semantics=("arbitrary",),
            vmem_limit_bytes=vmem_bytes),
    )(*art_in)
    a_simT = art_out[0]
    a_emb_p = art_out[1] if return_embeddings else None

    # ---------------- customer tower + sims: tiled 'parallel' grid ------------
    c_ids, c_num, c_w1, c_b1, c_w2, c_b2 = cust_in
    n_tiles = bc_pad // tile_m
    const = lambda shape: pl.BlockSpec(shape, lambda i: (0, 0))

    cust_in_specs = [
        pl.BlockSpec((tile_m, 1), lambda i: (i, 0)),        # ids (per tile)
        pl.BlockSpec((tile_m, c_k), lambda i: (i, 0)),      # fused numerical slab
        const((c_k, c_h)),                                   # W1f
        const((1, c_h)),                                     # b1
        const((c_h, e_pad)),                                 # W2
        const((1, e_pad)),                                   # b2
        const((e_pad, ba_pad)),                              # a_simT (resident RHS)
    ]
    cust_out_shape = [jax.ShapeDtypeStruct((bc_pad, ba_pad), jnp.float32)]
    cust_out_specs = [pl.BlockSpec((tile_m, ba_pad), lambda i: (i, 0))]
    if return_embeddings:
        cust_out_shape.append(jax.ShapeDtypeStruct((bc_pad, e_pad), jnp.float32))
        cust_out_specs.append(pl.BlockSpec((tile_m, e_pad), lambda i: (i, 0)))

    cust_out = pl.pallas_call(
        functools.partial(_customer_kernel, normalize=normalize, eps=eps,
                          inv_temperature=1.0 / float(temperature),
                          return_emb=return_embeddings),
        out_shape=tuple(cust_out_shape),
        grid=(n_tiles,),
        in_specs=cust_in_specs,
        out_specs=tuple(cust_out_specs),
        compiler_params=pltpu.CompilerParams(
            dimension_semantics=("parallel",),
            vmem_limit_bytes=vmem_bytes),
    )(c_ids, c_num, c_w1, c_b1, c_w2, c_b2, a_simT)

    sims = cust_out[0][:bc, :ba]
    if return_embeddings:
        c_emb = cust_out[1][:bc, :emb_dim]
        a_emb = a_emb_p[:ba, :emb_dim]
        return sims, c_emb, a_emb
    return sims


# ------------------------------------ main ------------------------------------

if __name__ == "__main__":
    B = 8               # batch size
    VOCAB = 16          # categorical vocab size
    CAT_DIM = 8         # categorical embedding dim
    NUM_NUM = 4         # numerical feature count
    HIDDEN = 32         # tower hidden dim
    EMB_DIM = 32        # shared embedding dim
    TEMPERATURE = 0.5

    root = jax.random.PRNGKey(0)
    k_cust, k_art, k_cid, k_cnum, k_aid, k_anum = jax.random.split(root, 6)

    cust_params = init_tower_params(k_cust, VOCAB, CAT_DIM, NUM_NUM, HIDDEN, EMB_DIM)
    art_params = init_tower_params(k_art, VOCAB, CAT_DIM, NUM_NUM, HIDDEN, EMB_DIM)

    customer_features = {
        "categorical": jax.random.randint(k_cid, (B,), 0, VOCAB, jnp.int32),
        "numerical": jax.random.normal(k_cnum, (B, NUM_NUM), jnp.float32),
    }
    article_features = {
        "categorical": jax.random.randint(k_aid, (B,), 0, VOCAB, jnp.int32),
        "numerical": jax.random.normal(k_anum, (B, NUM_NUM), jnp.float32),
    }

    sims, cust_emb, art_emb = two_tower_forward(
        cust_params, art_params, customer_features, article_features,
        temperature=TEMPERATURE, similarity_metric="cosine",
        return_embeddings=True)
    jax.block_until_ready(sims)

    sims_only = two_tower_forward(
        cust_params, art_params, customer_features, article_features,
        temperature=TEMPERATURE, similarity_metric="cosine",
        return_embeddings=False)
    jax.block_until_ready(sims_only)

    # pure-JAX reference check of the full forward pass
    def ref_tower(p, ids, num):
        x = jnp.concatenate([jnp.take(p["embed_table"], ids, axis=0), num], axis=1)
        h = jnp.maximum(jnp.dot(x, p["w1"], precision=lax.Precision.HIGHEST)
                        + p["b1"], 0.0)
        return jnp.dot(h, p["w2"], precision=lax.Precision.HIGHEST) + p["b2"]

    ce = ref_tower(cust_params, customer_features["categorical"],
                   customer_features["numerical"])
    ae = ref_tower(art_params, article_features["categorical"],
                   article_features["numerical"])
    cn = ce / jnp.maximum(jnp.linalg.norm(ce, axis=1, keepdims=True), 1e-12)
    an = ae / jnp.maximum(jnp.linalg.norm(ae, axis=1, keepdims=True), 1e-12)
    ref_sims = jnp.dot(cn, an.T, precision=lax.Precision.HIGHEST) / TEMPERATURE

    assert sims.shape == (B, B)
    assert sims_only.shape == (B, B)
    assert cust_emb.shape == (B, EMB_DIM) and art_emb.shape == (B, EMB_DIM)
    assert jnp.allclose(cust_emb, ce, atol=1e-5, rtol=1e-5)
    assert jnp.allclose(art_emb, ae, atol=1e-5, rtol=1e-5)
    assert jnp.allclose(sims, ref_sims, atol=1e-5, rtol=1e-5)
    assert jnp.allclose(sims_only, ref_sims, atol=1e-5, rtol=1e-5)
    print("KERNEL_OK")
</pallas_src>

<mosaic_0001>
module attributes {stable_mosaic.version = 11 : i64} {
  func.func @_article_kernel(%arg0: i32, %arg1: memref<128x1xi32, #tpu.memory_space<vmem>>, %arg2: memref<128x128xf32, #tpu.memory_space<vmem>>, %arg3: memref<128x128xf32, #tpu.memory_space<vmem>>, %arg4: memref<1x128xf32, #tpu.memory_space<vmem>>, %arg5: memref<128x128xf32, #tpu.memory_space<vmem>>, %arg6: memref<1x128xf32, #tpu.memory_space<vmem>>, %arg7: memref<128x128xf32, #tpu.memory_space<vmem>>, %arg8: memref<128x128xf32, #tpu.memory_space<vmem>>) attributes {dimension_semantics = [#tpu.dimension_semantics<arbitrary>], iteration_bounds = array<i64: 1>, scalar_prefetch = 0 : i64, scratch_operands = 0 : i64, tpu.core_type = #tpu.core_type<tc>, window_params = [{pipeline_mode = #tpu.pipeline_mode<synchronous>, transform_indices = @transform_0, window_bounds = array<i64: 128, 1>}, {pipeline_mode = #tpu.pipeline_mode<synchronous>, transform_indices = @transform_1, window_bounds = array<i64: 128, 128>}, {pipeline_mode = #tpu.pipeline_mode<synchronous>, transform_indices = @transform_2, window_bounds = array<i64: 128, 128>}, {pipeline_mode = #tpu.pipeline_mode<synchronous>, transform_indices = @transform_3, window_bounds = array<i64: 1, 128>}, {pipeline_mode = #tpu.pipeline_mode<synchronous>, transform_indices = @transform_4, window_bounds = array<i64: 128, 128>}, {pipeline_mode = #tpu.pipeline_mode<synchronous>, transform_indices = @transform_5, window_bounds = array<i64: 1, 128>}, {pipeline_mode = #tpu.pipeline_mode<synchronous>, transform_indices = @transform_6, window_bounds = array<i64: 128, 128>}, {pipeline_mode = #tpu.pipeline_mode<synchronous>, transform_indices = @transform_7, window_bounds = array<i64: 128, 128>}]} {
    %0 = tpu.iota {dimensions = array<i32: 1>} : vector<128x128xi32>
    %c0 = arith.constant 0 : index
    %c0_0 = arith.constant 0 : index
    %1 = vector.load %arg1[%c0, %c0_0] : memref<128x1xi32, #tpu.memory_space<vmem>>, vector<128x1xi32>
    %2 = vector.broadcast %1 : vector<128x1xi32> to vector<128x128xi32>
    %3 = arith.cmpi eq, %0, %2 : vector<128x128xi32>
    %4 = arith.extui %3 : vector<128x128xi1> to vector<128x128xi32>
    %5 = arith.sitofp %4 : vector<128x128xi32> to vector<128x128xf32>
    %c0_1 = arith.constant 0 : index
    %c0_2 = arith.constant 0 : index
    %6 = vector.load %arg2[%c0_1, %c0_2] : memref<128x128xf32, #tpu.memory_space<vmem>>, vector<128x128xf32>
    %7 = arith.addf %5, %6 : vector<128x128xf32>
    %c0_3 = arith.constant 0 : index
    %c0_4 = arith.constant 0 : index
    %8 = vector.load %arg3[%c0_3, %c0_4] : memref<128x128xf32, #tpu.memory_space<vmem>>, vector<128x128xf32>
    %cst = arith.constant dense<0.000000e+00> : vector<128x128xf32>
    %9 = tpu.matmul %7, %8, %cst {dimension_numbers = #tpu.dot_dimension_numbers<[1], [0], [0], [1], [0, 0, 1, 1], [], []>} : vector<128x128xf32>, vector<128x128xf32>, vector<128x128xf32> -> vector<128x128xf32>
    %c0_5 = arith.constant 0 : index
    %c0_6 = arith.constant 0 : index
    %10 = vector.load %arg4[%c0_5, %c0_6] : memref<1x128xf32, #tpu.memory_space<vmem>>, vector<1x128xf32>
    %11 = vector.broadcast %10 : vector<1x128xf32> to vector<128x128xf32>
    %12 = arith.addf %9, %11 : vector<128x128xf32>
    %cst_7 = arith.constant 0.000000e+00 : f32
    %13 = vector.broadcast %cst_7 : f32 to vector<128x128xf32>
    %14 = arith.maximumf %12, %13 : vector<128x128xf32>
    %c0_8 = arith.constant 0 : index
    %c0_9 = arith.constant 0 : index
    %15 = vector.load %arg5[%c0_8, %c0_9] : memref<128x128xf32, #tpu.memory_space<vmem>>, vector<128x128xf32>
    %cst_10 = arith.constant dense<0.000000e+00> : vector<128x128xf32>
    %16 = tpu.matmul %14, %15, %cst_10 {dimension_numbers = #tpu.dot_dimension_numbers<[1], [0], [0], [1], [0, 0, 1, 1], [], []>} : vector<128x128xf32>, vector<128x128xf32>, vector<128x128xf32> -> vector<128x128xf32>
    %c0_11 = arith.constant 0 : index
    %c0_12 = arith.constant 0 : index
    %17 = vector.load %arg6[%c0_11, %c0_12] : memref<1x128xf32, #tpu.memory_space<vmem>>, vector<1x128xf32>
    %18 = vector.broadcast %17 : vector<1x128xf32> to vector<128x128xf32>
    %19 = arith.addf %16, %18 : vector<128x128xf32>
    %20 = arith.mulf %19, %19 : vector<128x128xf32>
    %cst_13 = arith.constant dense<0.000000e+00> : vector<128xf32>
    %21 = vector.multi_reduction <add>, %20, %cst_13 [1] : vector<128x128xf32> to vector<128xf32>
    %22 = vector.shape_cast %21 : vector<128xf32> to vector<128x1xf32>
    %23 = math.sqrt %22 : vector<128x1xf32>
    %cst_14 = arith.constant 9.99999996E-13 : f32
    %24 = vector.broadcast %cst_14 : f32 to vector<128x1xf32>
    %25 = arith.maximumf %23, %24 : vector<128x1xf32>
    %26 = vector.broadcast %25 : vector<128x1xf32> to vector<128x128xf32>
    %27 = arith.divf %19, %26 : vector<128x128xf32>
    %28 = tpu.transpose %27, [1, 0] : vector<128x128xf32> -> vector<128x128xf32>
    %c0_15 = arith.constant 0 : index
    %c0_16 = arith.constant 0 : index
    %29 = vector.load %arg7[%c0_15, %c0_16] : memref<128x128xf32, #tpu.memory_space<vmem>>, vector<128x128xf32>
    tpu.vector_store %arg7[%c0_15, %c0_16], %28 {strides = array<i32>} : memref<128x128xf32, #tpu.memory_space<vmem>>, vector<128x128xf32>,
    %c0_17 = arith.constant 0 : index
    %c0_18 = arith.constant 0 : index
    %30 = vector.load %arg8[%c0_17, %c0_18] : memref<128x128xf32, #tpu.memory_space<vmem>>, vector<128x128xf32>
    tpu.vector_store %arg8[%c0_17, %c0_18], %19 {strides = array<i32>} : memref<128x128xf32, #tpu.memory_space<vmem>>, vector<128x128xf32>,
    return
  }
  func.func @transform_0(%arg0: i32) -> (i32, i32) {
    %c0_i32 = arith.constant 0 : i32
    %c0_i32_0 = arith.constant 0 : i32
    %c0_i32_1 = arith.constant 0 : i32
    return %c0_i32, %c0_i32_0 : i32, i32
  }
  func.func @transform_1(%arg0: i32) -> (i32, i32) {
    %c0_i32 = arith.constant 0 : i32
    %c0_i32_0 = arith.constant 0 : i32
    %c0_i32_1 = arith.constant 0 : i32
    return %c0_i32, %c0_i32_0 : i32, i32
  }
  func.func @transform_2(%arg0: i32) -> (i32, i32) {
    %c0_i32 = arith.constant 0 : i32
    %c0_i32_0 = arith.constant 0 : i32
    %c0_i32_1 = arith.constant 0 : i32
    return %c0_i32, %c0_i32_0 : i32, i32
  }
  func.func @transform_3(%arg0: i32) -> (i32, i32) {
    %c0_i32 = arith.constant 0 : i32
    %c0_i32_0 = arith.constant 0 : i32
    %c0_i32_1 = arith.constant 0 : i32
    return %c0_i32, %c0_i32_0 : i32, i32
  }
  func.func @transform_4(%arg0: i32) -> (i32, i32) {
    %c0_i32 = arith.constant 0 : i32
    %c0_i32_0 = arith.constant 0 : i32
    %c0_i32_1 = arith.constant 0 : i32
    return %c0_i32, %c0_i32_0 : i32, i32
  }
  func.func @transform_5(%arg0: i32) -> (i32, i32) {
    %c0_i32 = arith.constant 0 : i32
    %c0_i32_0 = arith.constant 0 : i32
    %c0_i32_1 = arith.constant 0 : i32
    return %c0_i32, %c0_i32_0 : i32, i32
  }
  func.func @transform_6(%arg0: i32) -> (i32, i32) {
    %c0_i32 = arith.constant 0 : i32
    %c0_i32_0 = arith.constant 0 : i32
    %c0_i32_1 = arith.constant 0 : i32
    return %c0_i32, %c0_i32_0 : i32, i32
  }
  func.func @transform_7(%arg0: i32) -> (i32, i32) {
    %c0_i32 = arith.constant 0 : i32
    %c0_i32_0 = arith.constant 0 : i32
    %c0_i32_1 = arith.constant 0 : i32
    return %c0_i32, %c0_i32_0 : i32, i32
  }
}

</mosaic_0001>

<bundles_post_ra>
// kernel: tpu_custom_call.1
= control target key start
LH: loop header
LB: loop body
LE: loop exit
PB: predicated region body
PF: predicated region fallthrough
CT: control target
= control target key end

     0   :  { %13 = vsyncpa [#allocation3], 0  ;;  %s1625_s0 = inlined_call_operand.vmem [shape: s32[128,1], index: 0, kind: input, shape index: {}]   ;;  %s1626_s1 = inlined_call_operand.vmem [shape: f32[128,128], index: 1, kind: input, shape index: {}]   ;;  %s1627_s2 = inlined_call_operand.hbm [shape: f32[128,128], index: 2, kind: input, shape index: {}]   ;;  %s1628_s3 = inlined_call_operand.vmem [shape: f32[1,128], index: 3, kind: input, shape index: {}]   ;;  %s1629_s4 = inlined_call_operand.hbm [shape: f32[128,128], index: 4, kind: input, shape index: {}]   ;;  %s1630_s5 = inlined_call_operand.vmem [shape: f32[1,128], index: 5, kind: input, shape index: {}]   ;;  %s1631_s6 = inlined_call_operand.hbm [shape: f32[128,128], index: 6, kind: output, shape index: {0}]   ;;  %s1632_s7 = inlined_call_operand.hbm [shape: f32[128,128], index: 7, kind: output, shape index: {1}]  }
   0x1   :  { %14 = vsyncpa [#allocation6], 0 }
   0x2   :  { %15 = vsyncpa [#allocation4], 0 }
   0x3   :  { %16 = vsyncpa [#allocation9], 0  ;;  %s1215_s24 = smov [#allocation2]  }
   0x4   :  { %s26_s25 = sshll.u32 %s1215_s24, 4  ;;  %s27_s25 = int_to_ptr.vmem [resolvable:$true] %s26_s25 }
   0x5   :  { %s1135_s26 = scalar_lea.vmem %s27_s25, 2048  ;;  %p1140_p1 = scmp.lt.s32.totalorder %s27_s25, %s27_s25 }
   0x6   :  { %p1136_p0 = scmp.ne.s32.totalorder %s27_s25, %s1135_s26  ;;  %p1141_p2 = scmp.lt.s32.totalorder %s1135_s26, %s1135_s26 }
   0x8   :  { %p1142_p3 = por %p1141_p2, %p1140_p1 }
   0xa   :  { %p1143_p4 = pnand %p1142_p3, %p1136_p0 }
   0xc   :  { %1146 = shalt.err (!%p1143_p4)
}
   0xd   :  { %s1216_s27 = smov 128   ;;  %s1217_s28 = smov 8  }
   0xe   :  { %32 = dma.hbm_to_vmem [thread:$0]  %s1627_s2, 2048, %s27_s25, [#allocation3], %s1216_s27, %s1216_s27, %s1217_s28  }
   0xf   :  { %s1218_s8 = smov [#allocation5]  }
  0x10   :  { %s40_s9 = sshll.u32 %s1218_s8, 4  ;;  %s41_s9 = int_to_ptr.vmem [resolvable:$true] %s40_s9 }
  0x11   :  { %s1155_s10 = scalar_lea.vmem %s41_s9, 2048  ;;  %p1160_p6 = scmp.lt.s32.totalorder %s41_s9, %s41_s9 }
  0x12   :  { %p1156_p5 = scmp.ne.s32.totalorder %s41_s9, %s1155_s10  ;;  %p1161_p7 = scmp.lt.s32.totalorder %s1155_s10, %s1155_s10 }
  0x14   :  { %p1162_p8 = por %p1161_p7, %p1160_p6 }
  0x16   :  { %p1163_p9 = pnand %p1162_p8, %p1156_p5 }
  0x18   :  { %1166 = shalt.err (!%p1163_p9)
}
  0x19   :  { %46 = dma.hbm_to_vmem [thread:$0]  %s1629_s4, 2048, %s41_s9, [#allocation6], %s1216_s27, %s1216_s27, %s1217_s28  }
  0x1a   :  { %1207 = dma.done.wait [#allocation3], 2048  }
  0x1b   :  { %1208 = vsyncadd [#allocation3], 4294965248 }
  0x1c   :  { %1209 = dma.done.wait [#allocation6], 2048  }
  0x1d   :  { %1210 = vsyncadd [#allocation6], 4294965248  ;;  %v1219_v0 = vmov 0   ;;  %v59_v1 = vld [vmem:[%s1625_s0 + $0x10] sm:$0xff]  ;;  %v57_v2 = vld [vmem:[%s1625_s0] sm:$0xff]  ;;  %v55_v45 = vlaneseq  ;;  %v1220_v50 = vmov 0.0  }
  0x1e   :  { %1062 = vset.pattern.permute.xlu1 %v1219_v0  ;;  %1061 = vset.pattern.permute.xlu0 %v1219_v0  ;;  %v60_v3 = vld [vmem:[%s1625_s0 + $0x18] sm:$0xff]  ;;  %v58_v4 = vld [vmem:[%s1625_s0 + $0x8] sm:$0xff]  ;;  %v215_v6 = vld [vmem:[#allocation2 + $0x70] sm:$0xff] }
  0x1f   :  { %80 = vperm.xlu1 %1062, %v59_v1   ;;  %74 = vperm.xlu0 %1061, %v57_v2   ;;  %v216_v5 = vld [vmem:[#allocation2 + $0x78] sm:$0xff]  ;;  %v62_v7 = vld [vmem:[%s1625_s0 + $0x28] sm:$0xff]  ;;  %v61_v8 = vld [vmem:[%s1625_s0 + $0x20] sm:$0xff]  ;;  %v1323_v46 = vand.u32 127, %v55_v45 }
  0x20   :  { %941 = vmatprep.subr.mxu0 %v216_v5  ;;  %v214_v9 = vld [vmem:[#allocation2 + $0x68] sm:$0xff]  ;;  %v64_v10 = vld [vmem:[%s1625_s0 + $0x38] sm:$0xff]  ;;  %v63_v11 = vld [vmem:[%s1625_s0 + $0x30] sm:$0xff] }
  0x21   :  { %942 = vmatpush3.msra.mxu0 %v216_v5  ;;  %v213_v12 = vld [vmem:[#allocation2 + $0x60] sm:$0xff]  ;;  %v212_v13 = vld [vmem:[#allocation2 + $0x58] sm:$0xff]  ;;  %v66_v14 = vld [vmem:[%s1625_s0 + $0x48] sm:$0xff] }
  0x22   :  { %943 = vmatprep.subr.mxu0 %v215_v6  ;;  %v65_v15 = vld [vmem:[%s1625_s0 + $0x40] sm:$0xff]  ;;  %v211_v16 = vld [vmem:[#allocation2 + $0x50] sm:$0xff]  ;;  %v68_v17 = vld [vmem:[%s1625_s0 + $0x58] sm:$0xff] }
  0x23   :  { %83 = vperm.xlu1 %1062, %v60_v3   ;;  %77 = vperm.xlu0 %1061, %v58_v4   ;;  %v67_v18 = vld [vmem:[%s1625_s0 + $0x50] sm:$0xff]  ;;  %v210_v19 = vld [vmem:[#allocation2 + $0x48] sm:$0xff]  ;;  %v209_v20 = vld [vmem:[#allocation2 + $0x40] sm:$0xff] }
  0x24   :  { %944 = vmatpush3.msra.mxu0 %v215_v6  ;;  %v70_v21 = vld [vmem:[%s1625_s0 + $0x68] sm:$0xff]  ;;  %v69_v22 = vld [vmem:[%s1625_s0 + $0x60] sm:$0xff]  ;;  %v208_v23 = vld [vmem:[#allocation2 + $0x38] sm:$0xff] }
  0x25   :  { %945 = vmatprep.subr.mxu0 %v214_v9  ;;  %v72_v24 = vld [vmem:[%s1625_s0 + $0x78] sm:$0xff]  ;;  %v71_v25 = vld [vmem:[%s1625_s0 + $0x70] sm:$0xff]  ;;  %v206_v27 = vld [vmem:[#allocation2 + $0x28] sm:$0xff] }
  0x26   :  { %946 = vmatpush3.msra.mxu0 %v214_v9  ;;  %v207_v26 = vld [vmem:[#allocation2 + $0x30] sm:$0xff]  ;;  %v205_v28 = vld [vmem:[#allocation2 + $0x20] sm:$0xff]  ;;  %v204_v29 = vld [vmem:[#allocation2 + $0x18] sm:$0xff] }
  0x27   :  { %89 = vperm.xlu1 %1062, %v62_v7   ;;  %86 = vperm.xlu0 %1061, %v61_v8   ;;  %v400_v30 = vld [vmem:[#allocation5 + $0x78] sm:$0xff]  ;;  %v399_v31 = vld [vmem:[#allocation5 + $0x70] sm:$0xff]  ;;  %v398_v33 = vld [vmem:[#allocation5 + $0x68] sm:$0xff] }
  0x28   :  { %947 = vmatprep.subr.mxu0 %v213_v12  ;;  %997 = vmatprep.subr.mxu1 %v400_v30  ;;  %v203_v32 = vld [vmem:[#allocation2 + $0x10] sm:$0xff]  ;;  %v202_v34 = vld [vmem:[#allocation2 + $0x8] sm:$0xff]  ;;  %v397_v35 = vld [vmem:[#allocation5 + $0x60] sm:$0xff] }
  0x29   :  { %948 = vmatpush3.msra.mxu0 %v213_v12  ;;  %998 = vmatpush3.msra.mxu1 %v400_v30  ;;  %v201_v36 = vld [vmem:[#allocation2] sm:$0xff]  ;;  %v396_v37 = vld [vmem:[#allocation5 + $0x58] sm:$0xff]  ;;  %v395_v38 = vld [vmem:[#allocation5 + $0x50] sm:$0xff] }
  0x2a   :  { %949 = vmatprep.subr.mxu0 %v212_v13  ;;  %999 = vmatprep.subr.mxu1 %v399_v31  ;;  %v394_v39 = vld [vmem:[#allocation5 + $0x48] sm:$0xff]  ;;  %v393_v40 = vld [vmem:[#allocation5 + $0x40] sm:$0xff]  ;;  %v392_v41 = vld [vmem:[#allocation5 + $0x38] sm:$0xff] }
  0x2b   :  { %95 = vperm.xlu1 %1062, %v64_v10   ;;  %92 = vperm.xlu0 %1061, %v63_v11   ;;  %v391_v42 = vld [vmem:[#allocation5 + $0x30] sm:$0xff]  ;;  %v390_v43 = vld [vmem:[#allocation5 + $0x28] sm:$0xff]  ;;  %v389_v44 = vld [vmem:[#allocation5 + $0x20] sm:$0xff] }
  0x2c   :  { %950 = vmatpush3.msra.mxu0 %v212_v13  ;;  %1000 = vmatpush3.msra.mxu1 %v399_v31  ;;  %v169_v49 = vld [vmem:[%s1626_s1] sm:$0xff]  ;;  %v171_v52 = vld [vmem:[%s1626_s1 + $0x10] sm:$0xff]  ;;  %v170_v56 = vld [vmem:[%s1626_s1 + $0x8] sm:$0xff] }
  0x2d   :  { %951 = vmatprep.subr.mxu0 %v211_v16  ;;  %1001 = vmatprep.subr.mxu1 %v398_v33  ;;  %v172_v59 = vld [vmem:[%s1626_s1 + $0x18] sm:$0xff]  ;;  %v173_v0 = vld [vmem:[%s1626_s1 + $0x20] sm:$0xff]  ;;  %v174_v5 = vld [vmem:[%s1626_s1 + $0x28] sm:$0xff] }
  0x2e   :  { %952 = vmatpush3.msra.mxu0 %v211_v16  ;;  %1002 = vmatpush3.msra.mxu1 %v398_v33  ;;  %v175_v8 = vld [vmem:[%s1626_s1 + $0x30] sm:$0xff]  ;;  %v176_v13 = vld [vmem:[%s1626_s1 + $0x38] sm:$0xff]  ;;  %v177_v16 = vld [vmem:[%s1626_s1 + $0x40] sm:$0xff] }
  0x2f   :  { %101 = vperm.xlu1 %1062, %v66_v14   ;;  %98 = vperm.xlu0 %1061, %v65_v15   ;;  %v184_v45 = vld [vmem:[%s1626_s1 + $0x78] sm:$0xff] }
  0x30   :  { %953 = vmatprep.subr.mxu0 %v210_v19  ;;  %1003 = vmatprep.subr.mxu1 %v397_v35 }
  0x31   :  { %954 = vmatpush3.msra.mxu0 %v210_v19  ;;  %1004 = vmatpush3.msra.mxu1 %v397_v35 }
  0x32   :  { %955 = vmatprep.subr.mxu0 %v209_v20  ;;  %1005 = vmatprep.subr.mxu1 %v396_v37 }
  0x33   :  { %107 = vperm.xlu1 %1062, %v68_v17   ;;  %104 = vperm.xlu0 %1061, %v67_v18  }
  0x34   :  { %956 = vmatpush3.msra.mxu0 %v209_v20  ;;  %1006 = vmatpush3.msra.mxu1 %v396_v37  ;;  %v182_v37 = vld [vmem:[%s1626_s1 + $0x68] sm:$0xff] }
  0x35   :  { %957 = vmatprep.subr.mxu0 %v208_v23  ;;  %1007 = vmatprep.subr.mxu1 %v395_v38 }
  0x36   :  { %958 = vmatpush3.msra.mxu0 %v208_v23  ;;  %1008 = vmatpush3.msra.mxu1 %v395_v38 }
  0x37   :  { %113 = vperm.xlu1 %1062, %v70_v21   ;;  %110 = vperm.xlu0 %1061, %v69_v22   ;;  %v178_v21 = vld [vmem:[%s1626_s1 + $0x48] sm:$0xff] }
  0x38   :  { %959 = vmatprep.subr.mxu0 %v207_v26  ;;  %1009 = vmatprep.subr.mxu1 %v394_v39 }
  0x39   :  { %960 = vmatpush3.msra.mxu0 %v207_v26  ;;  %1010 = vmatpush3.msra.mxu1 %v394_v39 }
  0x3a   :  { %961 = vmatprep.subr.mxu0 %v206_v27  ;;  %1011 = vmatprep.subr.mxu1 %v393_v40 }
  0x3b   :  { %119 = vperm.xlu1 %1062, %v72_v24   ;;  %116 = vperm.xlu0 %1061, %v71_v25   ;;  %v179_v24 = vld [vmem:[%s1626_s1 + $0x50] sm:$0xff] }
  0x3c   :  { %962 = vmatpush3.msra.mxu0 %v206_v27  ;;  %1012 = vmatpush3.msra.mxu1 %v393_v40  ;;  %v183_v40 = vld [vmem:[%s1626_s1 + $0x70] sm:$0xff] }
  0x3d   :  { %963 = vmatprep.subr.mxu0 %v205_v28  ;;  %1013 = vmatprep.subr.mxu1 %v392_v41 }
  0x3e   :  { %964 = vmatpush3.msra.mxu0 %v205_v28  ;;  %1014 = vmatpush3.msra.mxu1 %v392_v41 }
  0x3f   :  { %965 = vmatprep.subr.mxu0 %v204_v29  ;;  %1015 = vmatprep.subr.mxu1 %v391_v42 }
  0x40   :  { %966 = vmatpush3.msra.mxu0 %v204_v29  ;;  %1016 = vmatpush3.msra.mxu1 %v391_v42  ;;  %v180_v29 = vld [vmem:[%s1626_s1 + $0x58] sm:$0xff] }
  0x41   :  { %967 = vmatprep.subr.mxu0 %v203_v32  ;;  %1017 = vmatprep.subr.mxu1 %v390_v43 }
  0x42   :  { %968 = vmatpush3.msra.mxu0 %v203_v32  ;;  %1018 = vmatpush3.msra.mxu1 %v390_v43  ;;  %v181_v32 = vld [vmem:[%s1626_s1 + $0x60] sm:$0xff] }
  0x43   :  { %969 = vmatprep.subr.mxu0 %v202_v34  ;;  %1019 = vmatprep.subr.mxu1 %v389_v44 }
  0x44   :  { %970 = vmatpush3.msra.mxu0 %v202_v34  ;;  %1020 = vmatpush3.msra.mxu1 %v389_v44 }
  0x45   :  { %971 = vmatprep.subr.mxu0 %v201_v36 }
  0x46   :  { %972 = vmatpush3.msra.mxu0 %v201_v36 }
  0x9a   :  { %v81_v47 = vpop.permute.xlu1 %80  ;;  %v75_v48 = vpop.permute.xlu0 %74 }
  0x9b   :  { %vm123_vm0 = vcmp.eq.s32.totalorder %v1323_v46, %v81_v47  ;;  %vm121_vm1 = vcmp.eq.s32.totalorder %v1323_v46, %v75_v48 }
  0x9c   :  { %v859_v51 = vsel %vm121_vm1, 1.0, %v1220_v50  ;;  %v861_v53 = vsel %vm123_vm0, 1.0, %v1220_v50 }
  0x9d   :  { %v185_v54 = vadd.f32 %v859_v51, %v169_v49  ;;  %v187_v58 = vadd.f32 %v861_v53, %v171_v52  ;;  %v388_v49 = vld [vmem:[#allocation5 + $0x18] sm:$0xff]  ;;  %v386_v51 = vld [vmem:[#allocation5 + $0x8] sm:$0xff]  ;;  %v385_v52 = vld [vmem:[#allocation5] sm:$0xff] }
  0x9e   :  { %v84_v55 = vpop.permute.xlu1 %83  ;;  %v78_v57 = vpop.permute.xlu0 %77  ;;  %1021 = vmatprep.subr.mxu1 %v388_v49 }
  0x9f   :  { %vm124_vm2 = vcmp.eq.s32.totalorder %v1323_v46, %v84_v55  ;;  %vm122_vm3 = vcmp.eq.s32.totalorder %v1323_v46, %v78_v57  ;;  %973 = vmatprep.mubr.f32.mxu0 %v185_v54  ;;  %1022 = vmatpush3.msra.mxu1 %v388_v49 }
  0xa0   :  { %v862_v60 = vsel %vm124_vm2, 1.0, %v1220_v50  ;;  %v860_v61 = vsel %vm122_vm3, 1.0, %v1220_v50 }
  0xa1   :  { %v186_v62 = vadd.f32 %v860_v61, %v170_v56  ;;  %v188_v2 = vadd.f32 %v862_v60, %v172_v59 }
  0xa2   :  { %v90_v63 = vpop.permute.xlu1 %89  ;;  %v87_v1 = vpop.permute.xlu0 %86 }
  0xa3   :  { %vm126_vm4 = vcmp.eq.s32.totalorder %v1323_v46, %v90_v63  ;;  %vm125_vm5 = vcmp.eq.s32.totalorder %v1323_v46, %v87_v1  ;;  %974 = vmatmul.mubr.f32.vlgmr.msra.gmra.mxu0 %v186_v62 }
  0xa4   :  { %v863_v3 = vsel %vm125_vm5, 1.0, %v1220_v50  ;;  %976 = vmatprep.mubr.f32.mxu0 %v187_v58  ;;  %v864_v6 = vsel %vm126_vm4, 1.0, %v1220_v50 }
  0xa5   :  { %v189_v4 = vadd.f32 %v863_v3, %v173_v0  ;;  %v190_v11 = vadd.f32 %v864_v6, %v174_v5 }
  0xa6   :  { %v96_v7 = vpop.permute.xlu1 %95  ;;  %v93_v9 = vpop.permute.xlu0 %92 }
  0xa7   :  { %vm128_vm6 = vcmp.eq.s32.totalorder %v1323_v46, %v96_v7  ;;  %vm127_vm7 = vcmp.eq.s32.totalorder %v1323_v46, %v93_v9  ;;  %977 = vmatmul.mubr.f32.gmra.mxu0 %v188_v2 }
  0xa8   :  { %v865_v10 = vsel %vm127_vm7, 1.0, %v1220_v50  ;;  %979 = vmatprep.mubr.f32.mxu0 %v189_v4  ;;  %v866_v14 = vsel %vm128_vm6, 1.0, %v1220_v50 }
  0xa9   :  { %v191_v12 = vadd.f32 %v865_v10, %v175_v8  ;;  %v192_v19 = vadd.f32 %v866_v14, %v176_v13 }
  0xaa   :  { %v102_v15 = vpop.permute.xlu1 %101  ;;  %v99_v17 = vpop.permute.xlu0 %98 }
  0xab   :  { %vm130_vm8 = vcmp.eq.s32.totalorder %v1323_v46, %v102_v15  ;;  %vm129_vm9 = vcmp.eq.s32.totalorder %v1323_v46, %v99_v17  ;;  %980 = vmatmul.mubr.f32.gmra.mxu0 %v190_v11 }
  0xac   :  { %v867_v18 = vsel %vm129_vm9, 1.0, %v1220_v50  ;;  %982 = vmatprep.mubr.f32.mxu0 %v191_v12  ;;  %v868_v22 = vsel %vm130_vm8, 1.0, %v1220_v50 }
  0xad   :  { %v193_v20 = vadd.f32 %v867_v18, %v177_v16  ;;  %v194_v27 = vadd.f32 %v868_v22, %v178_v21 }
  0xae   :  { %v108_v23 = vpop.permute.xlu1 %107  ;;  %v105_v25 = vpop.permute.xlu0 %104 }
  0xaf   :  { %vm132_vm10 = vcmp.eq.s32.totalorder %v1323_v46, %v108_v23  ;;  %vm131_vm11 = vcmp.eq.s32.totalorder %v1323_v46, %v105_v25  ;;  %983 = vmatmul.mubr.f32.gmra.mxu0 %v192_v19 }
  0xb0   :  { %v869_v26 = vsel %vm131_vm11, 1.0, %v1220_v50  ;;  %985 = vmatprep.mubr.f32.mxu0 %v193_v20  ;;  %v870_v30 = vsel %vm132_vm10, 1.0, %v1220_v50 }
  0xb1   :  { %v195_v28 = vadd.f32 %v869_v26, %v179_v24  ;;  %v196_v35 = vadd.f32 %v870_v30, %v180_v29 }
  0xb2   :  { %v114_v31 = vpop.permute.xlu1 %113  ;;  %v111_v33 = vpop.permute.xlu0 %110 }
  0xb3   :  { %vm134_vm12 = vcmp.eq.s32.totalorder %v1323_v46, %v114_v31  ;;  %vm133_vm13 = vcmp.eq.s32.totalorder %v1323_v46, %v111_v33  ;;  %986 = vmatmul.mubr.f32.gmra.mxu0 %v194_v27 }
  0xb4   :  { %v871_v34 = vsel %vm133_vm13, 1.0, %v1220_v50  ;;  %988 = vmatprep.mubr.f32.mxu0 %v195_v28  ;;  %v872_v38 = vsel %vm134_vm12, 1.0, %v1220_v50 }
  0xb5   :  { %v197_v36 = vadd.f32 %v871_v34, %v181_v32  ;;  %v198_v43 = vadd.f32 %v872_v38, %v182_v37  ;;  %v1411_v37 = vld [vmem:[%s1630_s5] ss:$0 sm:$0xff]  ;;  %s1221_s5 = smov [#allocation8]  }
  0xb6   :  { %v120_v39 = vpop.permute.xlu1 %119  ;;  %v117_v41 = vpop.permute.xlu0 %116  ;;  %s842_s8 = sshll.u32 %s1221_s5, 4  ;;  %s843_s8 = int_to_ptr.vmem [resolvable:$true] %s842_s8 }
  0xb7   :  { %vm136_vm14 = vcmp.eq.s32.totalorder %v1323_v46, %v120_v39  ;;  %vm135_vm15 = vcmp.eq.s32.totalorder %v1323_v46, %v117_v41  ;;  %989 = vmatmul.mubr.f32.gmra.mxu0 %v196_v35  ;;  %v387_v46 = vld [vmem:[#allocation5 + $0x10] sm:$0xff]  ;;  %s1167_s9 = scalar_lea.vmem %s843_s8, 2048  ;;  %p1172_p11 = scmp.lt.s32.totalorder %s843_s8, %s843_s8 }
  0xb8   :  { %v873_v42 = vsel %vm135_vm15, 1.0, %v1220_v50  ;;  %991 = vmatprep.mubr.f32.mxu0 %v197_v36  ;;  %v874_v47 = vsel %vm136_vm14, 1.0, %v1220_v50  ;;  %1023 = vmatprep.subr.mxu1 %v387_v46  ;;  %v875_v50 = vld [vmem:[%s1628_s3] ss:$0 sm:$0xff]  ;;  %p1168_p10 = scmp.ne.s32.totalorder %s843_s8, %s1167_s9  ;;  %p1173_p12 = scmp.lt.s32.totalorder %s1167_s9, %s1167_s9 }
  0xb9   :  { %v199_v44 = vadd.f32 %v873_v42, %v183_v40  ;;  %v200_v48 = vadd.f32 %v874_v47, %v184_v45  ;;  %1024 = vmatpush3.msra.mxu1 %v387_v46 }
  0xba   :  { %1025 = vmatprep.subr.mxu1 %v386_v51  ;;  %p1174_p13 = por %p1173_p12, %p1172_p11 }
  0xbb   :  { %992 = vmatmul.mubr.f32.gmra.mxu0 %v198_v43  ;;  %1026 = vmatpush3.msra.mxu1 %v386_v51 }
  0xbc   :  { %994 = vmatprep.mubr.f32.mxu0 %v199_v44  ;;  %1027 = vmatprep.subr.mxu1 %v385_v52  ;;  %p1175_p0 = pnand %p1174_p13, %p1168_p10 }
  0xbd   :  { %1028 = vmatpush3.msra.mxu1 %v385_v52 }
  0xbf   :  { %995 = vmatmul.mubr.f32.gmra.mxu0 %v200_v48 }
 0x163   :  { %v975_v53 = vpop.f32.mrf.mxu0 }
 0x164   :  { %v296_v54 = vadd.f32 %v975_v53, %v875_v50 }
 0x165   :  { %v290_v55 = vpop.f32.mrf.mxu0 }
 0x166   :  { %v291_v56 = vadd.f32 %v875_v50, %v290_v55  ;;  %v370_v59 = vmax.f32 %v296_v54, 0.0 }
 0x167   :  { %v978_v57 = vpop.f32.mrf.mxu0 }
 0x168   :  { %v369_v58 = vmax.f32 %v291_v56, 0.0  ;;  %v306_v60 = vadd.f32 %v978_v57, %v875_v50 }
 0x169   :  { %v300_v61 = vpop.f32.mrf.mxu0 }
 0x16a   :  { %v301_v62 = vadd.f32 %v875_v50, %v300_v61  ;;  %1029 = vmatprep.mubr.f32.mxu1 %v369_v58  ;;  %v372_v1 = vmax.f32 %v306_v60, 0.0 }
 0x16b   :  { %v981_v63 = vpop.f32.mrf.mxu0  ;;  %1030 = vmatmul.mubr.f32.vlgmr.msra.gmra.mxu1 %v370_v59 }
 0x16c   :  { %v371_v0 = vmax.f32 %v301_v62, 0.0  ;;  %v316_v2 = vadd.f32 %v981_v63, %v875_v50 }
 0x16d   :  { %v310_v3 = vpop.f32.mrf.mxu0 }
 0x16e   :  { %v311_v4 = vadd.f32 %v875_v50, %v310_v3  ;;  %1032 = vmatprep.mubr.f32.mxu1 %v371_v0  ;;  %v374_v7 = vmax.f32 %v316_v2, 0.0 }
 0x16f   :  { %v984_v5 = vpop.f32.mrf.mxu0  ;;  %1033 = vmatmul.mubr.f32.gmra.mxu1 %v372_v1 }
 0x170   :  { %v373_v6 = vmax.f32 %v311_v4, 0.0  ;;  %v326_v8 = vadd.f32 %v984_v5, %v875_v50 }
 0x171   :  { %v320_v9 = vpop.f32.mrf.mxu0 }
 0x172   :  { %v321_v10 = vadd.f32 %v875_v50, %v320_v9  ;;  %1035 = vmatprep.mubr.f32.mxu1 %v373_v6  ;;  %v376_v13 = vmax.f32 %v326_v8, 0.0 }
 0x173   :  { %v987_v11 = vpop.f32.mrf.mxu0  ;;  %1036 = vmatmul.mubr.f32.gmra.mxu1 %v374_v7 }
 0x174   :  { %v375_v12 = vmax.f32 %v321_v10, 0.0  ;;  %v336_v14 = vadd.f32 %v987_v11, %v875_v50 }
 0x175   :  { %v330_v15 = vpop.f32.mrf.mxu0 }
 0x176   :  { %v331_v16 = vadd.f32 %v875_v50, %v330_v15  ;;  %1038 = vmatprep.mubr.f32.mxu1 %v375_v12  ;;  %v378_v19 = vmax.f32 %v336_v14, 0.0 }
 0x177   :  { %v990_v17 = vpop.f32.mrf.mxu0  ;;  %1039 = vmatmul.mubr.f32.gmra.mxu1 %v376_v13 }
 0x178   :  { %v377_v18 = vmax.f32 %v331_v16, 0.0  ;;  %v346_v20 = vadd.f32 %v990_v17, %v875_v50 }
 0x179   :  { %v340_v21 = vpop.f32.mrf.mxu0 }
 0x17a   :  { %v341_v22 = vadd.f32 %v875_v50, %v340_v21  ;;  %1041 = vmatprep.mubr.f32.mxu1 %v377_v18  ;;  %v380_v25 = vmax.f32 %v346_v20, 0.0 }
 0x17b   :  { %v993_v23 = vpop.f32.mrf.mxu0  ;;  %1042 = vmatmul.mubr.f32.gmra.mxu1 %v378_v19 }
 0x17c   :  { %v379_v24 = vmax.f32 %v341_v22, 0.0  ;;  %v356_v26 = vadd.f32 %v993_v23, %v875_v50 }
 0x17d   :  { %v350_v27 = vpop.f32.mrf.mxu0 }
 0x17e   :  { %v351_v28 = vadd.f32 %v875_v50, %v350_v27  ;;  %1044 = vmatprep.mubr.f32.mxu1 %v379_v24  ;;  %v382_v31 = vmax.f32 %v356_v26, 0.0 }
 0x17f   :  { %v996_v29 = vpop.f32.mrf.mxu0  ;;  %1045 = vmatmul.mubr.f32.gmra.mxu1 %v380_v25 }
 0x180   :  { %v381_v30 = vmax.f32 %v351_v28, 0.0  ;;  %v366_v32 = vadd.f32 %v996_v29, %v875_v50 }
 0x181   :  { %v360_v33 = vpop.f32.mrf.mxu0 }
 0x182   :  { %v361_v34 = vadd.f32 %v875_v50, %v360_v33  ;;  %1047 = vmatprep.mubr.f32.mxu1 %v381_v30  ;;  %v384_v36 = vmax.f32 %v366_v32, 0.0 }
 0x183   :  { %1048 = vmatmul.mubr.f32.gmra.mxu1 %v382_v31 }
 0x184   :  { %v383_v35 = vmax.f32 %v361_v34, 0.0 }
 0x186   :  { %1050 = vmatprep.mubr.f32.mxu1 %v383_v35 }
 0x187   :  { %1051 = vmatmul.mubr.f32.gmra.mxu1 %v384_v36 }
 0x22b   :  { %v1031_v38 = vpop.f32.mrf.mxu1 }
 0x22c   :  { %v1414_v39 = vadd.f32 %v1031_v38, %v1411_v37 }
 0x22d   :  { %v474_v40 = vpop.f32.mrf.mxu1 }
 0x22e   :  { %810 = vst [vmem:[#allocation8 + $0x8] sm:$0xff] %v1414_v39  ;;  %v1418_v41 = vadd.f32 %v1411_v37, %v474_v40  ;;  %v554_v42 = vmul.f32 %v1414_v39, %v1414_v39 }
 0x22f   :  { %v1034_v43 = vpop.f32.mrf.mxu1 }
 0x230   :  { %809 = vst [vmem:[#allocation8] sm:$0xff] %v1418_v41  ;;  %v1424_v44 = vadd.f32 %v1034_v43, %v1411_v37  ;;  %571 = vadd.xlane.f32.xlu1 %v554_v42  ;;  %v553_v45 = vmul.f32 %v1418_v41, %v1418_v41 }
 0x231   :  { %v484_v47 = vpop.f32.mrf.mxu1 }
 0x232   :  { %812 = vst [vmem:[#allocation8 + $0x18] sm:$0xff] %v1424_v44  ;;  %v1430_v48 = vadd.f32 %v1411_v37, %v484_v47  ;;  %569 = vadd.xlane.f32.xlu0 %v553_v45  ;;  %v556_v55 = vmul.f32 %v1424_v44, %v1424_v44 }
 0x233   :  { %v1037_v49 = vpop.f32.mrf.mxu1 }
 0x234   :  { %811 = vst [vmem:[#allocation8 + $0x10] sm:$0xff] %v1430_v48  ;;  %v1434_v46 = vadd.f32 %v1037_v49, %v1411_v37  ;;  %v555_v51 = vmul.f32 %v1430_v48, %v1430_v48 }
 0x235   :  { %v494_v52 = vpop.f32.mrf.mxu1 }
 0x236   :  { %814 = vst [vmem:[#allocation8 + $0x28] sm:$0xff] %v1434_v46  ;;  %v1440_v50 = vadd.f32 %v1411_v37, %v494_v52  ;;  %573 = vadd.xlane.f32.xlu0 %v555_v51  ;;  %v558_v61 = vmul.f32 %v1434_v46, %v1434_v46 }
 0x237   :  { %v1040_v53 = vpop.f32.mrf.mxu1 }
 0x238   :  { %813 = vst [vmem:[#allocation8 + $0x20] sm:$0xff] %v1440_v50  ;;  %v1444_v54 = vadd.f32 %v1040_v53, %v1411_v37  ;;  %v557_v56 = vmul.f32 %v1440_v50, %v1440_v50 }
 0x239   :  { %v504_v57 = vpop.f32.mrf.mxu1 }
 0x23a   :  { %816 = vst [vmem:[#allocation8 + $0x38] sm:$0xff] %v1444_v54  ;;  %v1452_v58 = vadd.f32 %v1411_v37, %v504_v57  ;;  %575 = vadd.xlane.f32.xlu0 %v556_v55  ;;  %577 = vadd.xlane.f32.xlu1 %v557_v56  ;;  %v560_v3 = vmul.f32 %v1444_v54, %v1444_v54 }
 0x23b   :  { %v1043_v59 = vpop.f32.mrf.mxu1 }
 0x23c   :  { %815 = vst [vmem:[#allocation8 + $0x30] sm:$0xff] %v1452_v58  ;;  %v1456_v60 = vadd.f32 %v1043_v59, %v1411_v37  ;;  %v559_v62 = vmul.f32 %v1452_v58, %v1452_v58 }
 0x23d   :  { %v514_v63 = vpop.f32.mrf.mxu1 }
 0x23e   :  { %818 = vst [vmem:[#allocation8 + $0x48] sm:$0xff] %v1456_v60  ;;  %v1464_v0 = vadd.f32 %v1411_v37, %v514_v63  ;;  %579 = vadd.xlane.f32.xlu0 %v558_v61  ;;  %581 = vadd.xlane.f32.xlu1 %v559_v62  ;;  %v562_v9 = vmul.f32 %v1456_v60, %v1456_v60 }
 0x23f   :  { %v1046_v1 = vpop.f32.mrf.mxu1 }
 0x240   :  { %817 = vst [vmem:[#allocation8 + $0x40] sm:$0xff] %v1464_v0  ;;  %v1468_v2 = vadd.f32 %v1046_v1, %v1411_v37  ;;  %v561_v4 = vmul.f32 %v1464_v0, %v1464_v0 }
 0x241   :  { %v524_v5 = vpop.f32.mrf.mxu1 }
 0x242   :  { %820 = vst [vmem:[#allocation8 + $0x58] sm:$0xff] %v1468_v2  ;;  %v1476_v6 = vadd.f32 %v1411_v37, %v524_v5  ;;  %583 = vadd.xlane.f32.xlu0 %v560_v3  ;;  %585 = vadd.xlane.f32.xlu1 %v561_v4  ;;  %v564_v15 = vmul.f32 %v1468_v2, %v1468_v2 }
 0x243   :  { %v1049_v7 = vpop.f32.mrf.mxu1 }
 0x244   :  { %819 = vst [vmem:[#allocation8 + $0x50] sm:$0xff] %v1476_v6  ;;  %v1480_v8 = vadd.f32 %v1049_v7, %v1411_v37  ;;  %v563_v10 = vmul.f32 %v1476_v6, %v1476_v6 }
 0x245   :  { %v534_v11 = vpop.f32.mrf.mxu1 }
 0x246   :  { %822 = vst [vmem:[#allocation8 + $0x68] sm:$0xff] %v1480_v8  ;;  %v1488_v12 = vadd.f32 %v1411_v37, %v534_v11  ;;  %587 = vadd.xlane.f32.xlu0 %v562_v9  ;;  %589 = vadd.xlane.f32.xlu1 %v563_v10  ;;  %v566_v19 = vmul.f32 %v1480_v8, %v1480_v8 }
 0x247   :  { %v1052_v13 = vpop.f32.mrf.mxu1 }
 0x248   :  { %821 = vst [vmem:[#allocation8 + $0x60] sm:$0xff] %v1488_v12  ;;  %v1492_v14 = vadd.f32 %v1052_v13, %v1411_v37  ;;  %v565_v16 = vmul.f32 %v1488_v12, %v1488_v12 }
 0x249   :  { %v544_v17 = vpop.f32.mrf.mxu1 }
 0x24a   :  { %824 = vst [vmem:[#allocation8 + $0x78] sm:$0xff] %v1492_v14  ;;  %v1500_v18 = vadd.f32 %v1411_v37, %v544_v17  ;;  %591 = vadd.xlane.f32.xlu0 %v564_v15  ;;  %593 = vadd.xlane.f32.xlu1 %v565_v16  ;;  %v568_v21 = vmul.f32 %v1492_v14, %v1492_v14 }
 0x24c   :  { %823 = vst [vmem:[#allocation8 + $0x70] sm:$0xff] %v1500_v18  ;;  %v567_v20 = vmul.f32 %v1500_v18, %v1500_v18 }
 0x24e   :  { %595 = vadd.xlane.f32.xlu0 %v566_v19  ;;  %597 = vadd.xlane.f32.xlu1 %v567_v20 }
 0x252   :  { %599 = vadd.xlane.f32.xlu0 %v568_v21 }
 0x2b9   :  { %v572_v22 = vpop.xlane.xlu1 %571 }
 0x2ba   :  { %1063 = vrsqrt.f32 %v572_v22  ;;  %vm610_vm0 = vcmp.eq.f32.partialorder %v572_v22, inf  ;;  %v613_v34 = vand.u32 2147483648, %v572_v22  ;;  %vm612_vm2 = vcmp.eq.f32.partialorder %v572_v22, 0.0 }
 0x2bb   :  { %v570_v23 = vpop.xlane.xlu0 %569 }
 0x2bc   :  { %1065 = vrsqrt.f32 %v570_v23  ;;  %vm603_vm1 = vcmp.eq.f32.partialorder %v570_v23, inf  ;;  %v606_v35 = vand.u32 2147483648, %v570_v23  ;;  %vm605_vm3 = vcmp.eq.f32.partialorder %v570_v23, 0.0 }
 0x2bf   :  { %v574_v24 = vpop.xlane.xlu0 %573 }
 0x2c0   :  { %1067 = vrsqrt.f32 %v574_v24  ;;  %vm617_vm4 = vcmp.eq.f32.partialorder %v574_v24, inf  ;;  %v620_v47 = vand.u32 2147483648, %v574_v24  ;;  %vm619_vm5 = vcmp.eq.f32.partialorder %v574_v24, 0.0 }
 0x2c3   :  { %v578_v25 = vpop.xlane.xlu1 %577  ;;  %v576_v26 = vpop.xlane.xlu0 %575 }
 0x2c4   :  { %1069 = vrsqrt.f32 %v578_v25  ;;  %vm624_vm6 = vcmp.eq.f32.partialorder %v576_v26, inf  ;;  %v627_v63 = vand.u32 2147483648, %v576_v26  ;;  %vm631_vm7 = vcmp.eq.f32.partialorder %v578_v25, inf }
 0x2c5   :  { %1071 = vrsqrt.f32 %v576_v26  ;;  %vm626_vm8 = vcmp.eq.f32.partialorder %v576_v26, 0.0  ;;  %v634_v9 = vand.u32 2147483648, %v578_v25  ;;  %vm633_vm9 = vcmp.eq.f32.partialorder %v578_v25, 0.0 }
 0x2c7   :  { %v1064_v27 = vpop.eup %1063  ;;  %v1509_v28 = vpop.xlane.xlu1 %581 }
 0x2c8   :  { %v1511_v29 = vpop.xlane.xlu0 %579  ;;  %v609_v30 = vmul.f32 %v1064_v27, %v572_v22  ;;  %vm645_vm12 = vcmp.eq.f32.partialorder %v1509_v28, inf  ;;  %vm647_vm13 = vcmp.eq.f32.partialorder %v1509_v28, 0.0 }
 0x2c9   :  { %v1066_v31 = vpop.eup %1065  ;;  %1073 = vrsqrt.f32 %v1511_v29  ;;  %vm638_vm10 = vcmp.eq.f32.partialorder %v1511_v29, inf  ;;  %v641_v20 = vand.u32 2147483648, %v1511_v29  ;;  %vm640_vm11 = vcmp.eq.f32.partialorder %v1511_v29, 0.0 }
 0x2ca   :  { %v611_v32 = vsel %vm610_vm0, %v572_v22, %v609_v30  ;;  %v602_v33 = vmul.f32 %v1066_v31, %v570_v23  ;;  %1075 = vrsqrt.f32 %v1509_v28  ;;  %v648_v30 = vand.u32 2147483648, %v1509_v28 }
 0x2cb   :  { %v614_v40 = vsel %vm612_vm2, %v613_v34, %v611_v32  ;;  %v1518_v49 = vpop.xlane.xlu1 %585 }
 0x2cc   :  { %v1515_v36 = vpop.xlane.xlu0 %583  ;;  %v604_v37 = vsel %vm603_vm1, %v570_v23, %v602_v33  ;;  %v714_v51 = vmax.f32 %v614_v40, 1e-12  ;;  %vm659_vm0 = vcmp.eq.f32.partialorder %v1518_v49, inf  ;;  %vm661_vm1 = vcmp.eq.f32.partialorder %v1518_v49, 0.0 }
 0x2cd   :  { %v1068_v38 = vpop.eup %1067  ;;  %v607_v42 = vsel %vm605_vm3, %v606_v35, %v604_v37  ;;  %1077 = vrsqrt.f32 %v1515_v36  ;;  %vm652_vm14 = vcmp.eq.f32.partialorder %v1515_v36, inf  ;;  %v655_v40 = vand.u32 2147483648, %v1515_v36 }
 0x2ce   :  { %v713_v43 = vmax.f32 %v607_v42, 1e-12  ;;  %v616_v45 = vmul.f32 %v1068_v38, %v574_v24  ;;  %vm654_vm15 = vcmp.eq.f32.partialorder %v1515_v36, 0.0 }
 0x2cf   :  { %v1525_v11 = vpop.xlane.xlu1 %589 }
 0x2d0   :  { %1079 = vrcp.f32 %v713_v43  ;;  %v618_v52 = vsel %vm617_vm4, %v574_v24, %v616_v45  ;;  %v1521_v61 = vpop.xlane.xlu0 %587  ;;  %vm673_vm4 = vcmp.eq.f32.partialorder %v1525_v11, inf }
 0x2d1   :  { %v1070_v53 = vpop.eup %1069  ;;  %v621_v55 = vsel %vm619_vm5, %v620_v47, %v618_v52  ;;  %1081 = vrsqrt.f32 %v1518_v49  ;;  %vm666_vm2 = vcmp.eq.f32.partialorder %v1521_v61, inf  ;;  %vm668_vm3 = vcmp.eq.f32.partialorder %v1521_v61, 0.0 }
 0x2d2   :  { %v1072_v56 = vpop.eup %1071  ;;  %v630_v57 = vmul.f32 %v1070_v53, %v578_v25  ;;  %1083 = vrcp.f32 %v714_v51  ;;  %v715_v62 = vmax.f32 %v621_v55, 1e-12  ;;  %v662_v53 = vand.u32 2147483648, %v1518_v49 }
 0x2d3   :  { %v623_v59 = vmul.f32 %v1072_v56, %v576_v26  ;;  %1085 = vrsqrt.f32 %v1521_v61  ;;  %v1540_v31 = vpop.xlane.xlu1 %593  ;;  %vm675_vm5 = vcmp.eq.f32.partialorder %v1525_v11, 0.0 }
 0x2d4   :  { %v632_v4 = vsel %vm631_vm7, %v578_v25, %v630_v57  ;;  %1087 = vrcp.f32 %v715_v62  ;;  %v1532_v21 = vpop.xlane.xlu0 %591 }
 0x2d5   :  { %v625_v1 = vsel %vm624_vm6, %v576_v26, %v623_v59  ;;  %v635_v15 = vsel %vm633_vm9, %v634_v9, %v632_v4  ;;  %1089 = vrsqrt.f32 %v1525_v11  ;;  %vm680_vm6 = vcmp.eq.f32.partialorder %v1532_v21, inf }
 0x2d6   :  { %v1074_v3 = vpop.eup %1073  ;;  %v628_v5 = vsel %vm626_vm8, %v627_v63, %v625_v1  ;;  %v717_v22 = vmax.f32 %v635_v15, 1e-12  ;;  %v669_v1 = vand.u32 2147483648, %v1521_v61  ;;  %vm682_vm7 = vcmp.eq.f32.partialorder %v1532_v21, 0.0 }
 0x2d7   :  { %v1076_v7 = vpop.eup %1075  ;;  %v637_v10 = vmul.f32 %v1074_v3, %v1511_v29  ;;  %v716_v13 = vmax.f32 %v628_v5, 1e-12  ;;  %v1558_v55 = vpop.xlane.xlu1 %597  ;;  %vm687_vm8 = vcmp.eq.f32.partialorder %v1540_v31, inf  ;;  %vm689_vm9 = vcmp.eq.f32.partialorder %v1540_v31, 0.0 }
 0x2d8   :  { %v644_v16 = vmul.f32 %v1076_v7, %v1509_v28  ;;  %v1549_v42 = vpop.xlane.xlu0 %595 }
 0x2d9   :  { %v639_v17 = vsel %vm638_vm10, %v1511_v29, %v637_v10  ;;  %1091 = vrcp.f32 %v716_v13  ;;  %v676_v13 = vand.u32 2147483648, %v1525_v11  ;;  %vm694_vm10 = vcmp.eq.f32.partialorder %v1549_v42, inf }
 0x2da   :  { %v1078_v19 = vpop.eup %1077  ;;  %v642_v24 = vsel %vm640_vm11, %v641_v20, %v639_v17  ;;  %v646_v25 = vsel %vm645_vm12, %v1509_v28, %v644_v16  ;;  %1093 = vrsqrt.f32 %v1532_v21  ;;  %vm696_vm11 = vcmp.eq.f32.partialorder %v1549_v42, 0.0 }
 0x2db   :  { %v651_v26 = vmul.f32 %v1078_v19, %v1515_v36  ;;  %1095 = vrcp.f32 %v717_v22  ;;  %v718_v32 = vmax.f32 %v642_v24, 1e-12  ;;  %v649_v34 = vsel %vm647_vm13, %v648_v30, %v646_v25 }
 0x2dc   :  { %1097 = vrsqrt.f32 %v1540_v31  ;;  %v719_v28 = vmax.f32 %v649_v34, 1e-12  ;;  %v1567_v3 = vpop.xlane.xlu0 %599  ;;  %v683_v22 = vand.u32 2147483648, %v1532_v21  ;;  %v690_v30 = vand.u32 2147483648, %v1540_v31 }
 0x2dd   :  { %v1080_v23 = vpop.eup %1079  ;;  %v653_v37 = vsel %vm652_vm14, %v1515_v36, %v651_v26  ;;  %1099 = vrcp.f32 %v718_v32  ;;  %vm701_vm12 = vcmp.eq.f32.partialorder %v1558_v55, inf  ;;  %vm703_vm13 = vcmp.eq.f32.partialorder %v1558_v55, 0.0 }
 0x2de   :  { %v1082_v27 = vpop.eup %1081  ;;  %v730_v29 = vmul.f32 %v1080_v23, %v1418_v41  ;;  %v656_v45 = vsel %vm654_vm15, %v655_v40, %v653_v37  ;;  %1101 = vrsqrt.f32 %v1549_v42  ;;  %v697_v37 = vand.u32 2147483648, %v1549_v42 }
 0x2df   :  { %v1084_v33 = vpop.eup %1083  ;;  %v658_v35 = vmul.f32 %v1082_v27, %v1518_v49  ;;  %1103 = vrcp.f32 %v719_v28  ;;  %vm708_vm14 = vcmp.eq.f32.partialorder %v1567_v3, inf  ;;  %vm710_vm15 = vcmp.eq.f32.partialorder %v1567_v3, 0.0 }
 0x2e0   :  { %761 = vxpose.xlu1.b32.start [1/16] %v730_v29, 128  ;;  %v1086_v38 = vpop.eup %1085  ;;  %v732_v41 = vmul.f32 %v1084_v33, %v1414_v39  ;;  %v720_v39 = vmax.f32 %v656_v45, 1e-12  ;;  %1105 = vrsqrt.f32 %v1558_v55 }
 0x2e1   :  { %v1088_v43 = vpop.eup %1087  ;;  %v660_v47 = vsel %vm659_vm0, %v1518_v49, %v658_v35  ;;  %v665_v51 = vmul.f32 %v1086_v38, %v1521_v61 }
 0x2e2   :  { %v1090_v52 = vpop.eup %1089  ;;  %v734_v36 = vmul.f32 %v1088_v43, %v1430_v48  ;;  %v663_v57 = vsel %vm661_vm1, %v662_v53, %v660_v47  ;;  %1107 = vrcp.f32 %v720_v39  ;;  %v704_v43 = vand.u32 2147483648, %v1558_v55 }
 0x2e3   :  { %v672_v59 = vmul.f32 %v1090_v52, %v1525_v11  ;;  %v667_v62 = vsel %vm666_vm2, %v1521_v61, %v665_v51  ;;  %v721_v49 = vmax.f32 %v663_v57, 1e-12  ;;  %1109 = vrsqrt.f32 %v1567_v3 }
 0x2e4   :  { %762 = vxpose.xlu1.b32.cont [2/16] %v732_v41, 128  ;;  %v670_v5 = vsel %vm668_vm3, %v669_v1, %v667_v62  ;;  %v711_v52 = vand.u32 2147483648, %v1567_v3 }
 0x2e5   :  { %v674_v7 = vsel %vm673_vm4, %v1525_v11, %v672_v59  ;;  %1111 = vrcp.f32 %v721_v49  ;;  %v722_v61 = vmax.f32 %v670_v5, 1e-12 }
 0x2e6   :  { %v1092_v56 = vpop.eup %1091  ;;  %v677_v16 = vsel %vm675_vm5, %v676_v13, %v674_v7 }
 0x2e7   :  { %v1094_v63 = vpop.eup %1093  ;;  %v736_v48 = vmul.f32 %v1092_v56, %v1424_v44  ;;  %v723_v23 = vmax.f32 %v677_v16, 1e-12  ;;  %1113 = vrcp.f32 %v722_v61 }
 0x2e8   :  { %763 = vxpose.xlu1.b32.cont [3/16] %v734_v36, 128  ;;  %v1096_v4 = vpop.eup %1095  ;;  %v679_v9 = vmul.f32 %v1094_v63, %v1532_v21 }
 0x2e9   :  { %v1098_v10 = vpop.eup %1097  ;;  %v738_v44 = vmul.f32 %v1096_v4, %v1440_v50  ;;  %1115 = vrcp.f32 %v723_v23 }
 0x2ea   :  { %v1100_v15 = vpop.eup %1099  ;;  %v686_v17 = vmul.f32 %v1098_v10, %v1540_v31  ;;  %v681_v19 = vsel %vm680_vm6, %v1532_v21, %v679_v9 }
 0x2eb   :  { %v1102_v20 = vpop.eup %1101  ;;  %v740_v11 = vmul.f32 %v1100_v15, %v1434_v46  ;;  %v684_v50 = vsel %vm682_vm7, %v683_v22, %v681_v19 }
 0x2ec   :  { %764 = vxpose.xlu1.b32.cont [4/16] %v736_v48, 128  ;;  %v1104_v24 = vpop.eup %1103  ;;  %v688_v25 = vsel %vm687_vm8, %v1540_v31, %v686_v17  ;;  %v693_v26 = vmul.f32 %v1102_v20, %v1549_v42  ;;  %v724_v32 = vmax.f32 %v684_v50, 1e-12 }
 0x2ed   :  { %v1106_v27 = vpop.eup %1105  ;;  %v742_v21 = vmul.f32 %v1104_v24, %v1452_v58  ;;  %v691_v46 = vsel %vm689_vm9, %v690_v30, %v688_v25 }
 0x2ee   :  { %v700_v33 = vmul.f32 %v1106_v27, %v1558_v55  ;;  %v695_v34 = vsel %vm694_vm10, %v1549_v42, %v693_v26  ;;  %v725_v38 = vmax.f32 %v691_v46, 1e-12  ;;  %1117 = vrcp.f32 %v724_v32 }
 0x2ef   :  { %v1108_v29 = vpop.eup %1107  ;;  %v698_v58 = vsel %vm696_vm11, %v697_v37, %v695_v34 }
 0x2f0   :  { %765 = vxpose.xlu1.b32.cont [5/16] %v738_v44, 128  ;;  %v1110_v35 = vpop.eup %1109  ;;  %v744_v31 = vmul.f32 %v1108_v29, %v1444_v54  ;;  %v702_v28 = vsel %vm701_vm12, %v1558_v55, %v700_v33  ;;  %1119 = vrcp.f32 %v725_v38  ;;  %v726_v45 = vmax.f32 %v698_v58, 1e-12 }
 0x2f1   :  { %v707_v41 = vmul.f32 %v1110_v35, %v1567_v3  ;;  %v705_v51 = vsel %vm703_vm13, %v704_v43, %v702_v28 }
 0x2f2   :  { %v1112_v40 = vpop.eup %1111  ;;  %v727_v53 = vmax.f32 %v705_v51, 1e-12  ;;  %1121 = vrcp.f32 %v726_v45 }
 0x2f3   :  { %v746_v47 = vmul.f32 %v1112_v40, %v1464_v0  ;;  %v709_v54 = vsel %vm708_vm14, %v1567_v3, %v707_v41 }
 0x2f4   :  { %766 = vxpose.xlu1.b32.cont [6/16] %v740_v11, 128  ;;  %v1114_v42 = vpop.eup %1113  ;;  %v712_v55 = vsel %vm710_vm15, %v711_v52, %v709_v54  ;;  %1123 = vrcp.f32 %v727_v53 }
 0x2f5   :  { %v748_v39 = vmul.f32 %v1114_v42, %v1456_v60  ;;  %v728_v0 = vmax.f32 %v712_v55, 1e-12 }
 0x2f6   :  { %v1116_v36 = vpop.eup %1115 }
 0x2f7   :  { %v750_v56 = vmul.f32 %v1116_v36, %v1476_v6  ;;  %1125 = vrcp.f32 %v728_v0 }
 0x2f8   :  { %767 = vxpose.xlu1.b32.cont [7/16] %v742_v21, 128 }
 0x2fb   :  { %v1118_v57 = vpop.eup %1117 }
 0x2fc   :  { %768 = vxpose.xlu1.b32.cont [8/16] %v744_v31, 128  ;;  %v752_v59 = vmul.f32 %v1118_v57, %v1468_v2 }
 0x2fd   :  { %v1120_v62 = vpop.eup %1119 }
 0x2fe   :  { %v754_v63 = vmul.f32 %v1120_v62, %v1488_v12 }
 0x2ff   :  { %v1122_v1 = vpop.eup %1121 }
 0x300   :  { %769 = vxpose.xlu1.b32.cont [9/16] %v746_v47, 128  ;;  %v756_v60 = vmul.f32 %v1122_v1, %v1480_v8 }
 0x301   :  { %v1124_v3 = vpop.eup %1123 }
 0x302   :  { %v758_v49 = vmul.f32 %v1124_v3, %v1500_v18 }
 0x304   :  { %770 = vxpose.xlu1.b32.cont [10/16] %v748_v39, 128  ;;  %v1126_v48 = vpop.eup %1125 }
 0x305   :  { %v760_v6 = vmul.f32 %v1126_v48, %v1492_v14 }
 0x308   :  { %771 = vxpose.xlu1.b32.cont [11/16] %v750_v56, 128 }
 0x30c   :  { %772 = vxpose.xlu1.b32.cont [12/16] %v752_v59, 128 }
 0x310   :  { %773 = vxpose.xlu1.b32.cont [13/16] %v754_v63, 128 }
 0x314   :  { %774 = vxpose.xlu1.b32.cont [14/16] %v756_v60, 128 }
 0x318   :  { %775 = vxpose.xlu1.b32.cont [15/16] %v758_v49, 128 }
 0x31c   :  { %776 = vxpose.xlu1.b32.end [16/16] %v760_v6, 128 }
 0x31d   :  { %1178 = shalt.err (!%p1175_p0)
}
 0x31e   :  { %848 = dma.vmem_to_hbm [thread:$0]  %s843_s8, 2048, %s1632_s7, [#allocation9], %s1216_s27, %s1216_s27, %s1217_s28  }
 0x31f   :  { %s1222_s7 = smov [#allocation7]  }
 0x320   :  { %s830_s12 = sshll.u32 %s1222_s7, 4  ;;  %s831_s12 = int_to_ptr.vmem [resolvable:$true] %s830_s12 }
 0x321   :  { %s1187_s2 = scalar_lea.vmem %s831_s12, 2048  ;;  %p1192_p2 = scmp.lt.s32.totalorder %s831_s12, %s831_s12 }
 0x322   :  { %p1188_p1 = scmp.ne.s32.totalorder %s831_s12, %s1187_s2  ;;  %p1193_p3 = scmp.lt.s32.totalorder %s1187_s2, %s1187_s2 }
 0x324   :  { %p1194_p4 = por %p1193_p3, %p1192_p2 }
 0x326   :  { %p1195_p5 = pnand %p1194_p4, %p1188_p1 }
 0x35c   :  { %v777_v2 = vpop.trf.xlu1 }
 0x35d   :  { %793 = vst [vmem:[#allocation7] sm:$0xff] %v777_v2 }
 0x360   :  { %v778_v8 = vpop.trf.xlu1 }
 0x361   :  { %794 = vst [vmem:[#allocation7 + $0x8] sm:$0xff] %v778_v8 }
 0x364   :  { %v779_v12 = vpop.trf.xlu1 }
 0x365   :  { %795 = vst [vmem:[#allocation7 + $0x10] sm:$0xff] %v779_v12 }
 0x368   :  { %v780_v14 = vpop.trf.xlu1 }
 0x369   :  { %796 = vst [vmem:[#allocation7 + $0x18] sm:$0xff] %v780_v14 }
 0x36c   :  { %v781_v18 = vpop.trf.xlu1 }
 0x36d   :  { %797 = vst [vmem:[#allocation7 + $0x20] sm:$0xff] %v781_v18 }
 0x370   :  { %v782_v4 = vpop.trf.xlu1 }
 0x371   :  { %798 = vst [vmem:[#allocation7 + $0x28] sm:$0xff] %v782_v4 }
 0x374   :  { %v783_v5 = vpop.trf.xlu1 }
 0x375   :  { %799 = vst [vmem:[#allocation7 + $0x30] sm:$0xff] %v783_v5 }
 0x378   :  { %v784_v7 = vpop.trf.xlu1 }
 0x379   :  { %800 = vst [vmem:[#allocation7 + $0x38] sm:$0xff] %v784_v7 }
 0x37c   :  { %v785_v9 = vpop.trf.xlu1 }
 0x37d   :  { %801 = vst [vmem:[#allocation7 + $0x40] sm:$0xff] %v785_v9 }
 0x380   :  { %v786_v10 = vpop.trf.xlu1 }
 0x381   :  { %802 = vst [vmem:[#allocation7 + $0x48] sm:$0xff] %v786_v10 }
 0x384   :  { %v787_v13 = vpop.trf.xlu1 }
 0x385   :  { %803 = vst [vmem:[#allocation7 + $0x50] sm:$0xff] %v787_v13 }
 0x388   :  { %v788_v61 = vpop.trf.xlu1 }
 0x389   :  { %804 = vst [vmem:[#allocation7 + $0x58] sm:$0xff] %v788_v61 }
 0x38c   :  { %v789_v44 = vpop.trf.xlu1 }
 0x38d   :  { %805 = vst [vmem:[#allocation7 + $0x60] sm:$0xff] %v789_v44 }
 0x390   :  { %v790_v15 = vpop.trf.xlu1 }
 0x391   :  { %806 = vst [vmem:[#allocation7 + $0x68] sm:$0xff] %v790_v15 }
 0x394   :  { %v791_v16 = vpop.trf.xlu1 }
 0x395   :  { %807 = vst [vmem:[#allocation7 + $0x70] sm:$0xff] %v791_v16 }
 0x398   :  { %v792_v17 = vpop.trf.xlu1 }
 0x399   :  { %808 = vst [vmem:[#allocation7 + $0x78] sm:$0xff] %v792_v17 }
 0x39a   :  { %1198 = shalt.err (!%p1195_p5)
}
 0x39b   :  { %836 = dma.vmem_to_hbm [thread:$0]  %s831_s12, 2048, %s1631_s6, [#allocation4], %s1216_s27, %s1216_s27, %s1217_s28  }
 0x39c   :  { %1211 = dma.done.wait [#allocation4], 2048  }
 0x39d   :  { %1212 = vsyncadd [#allocation4], 4294965248 }
 0x39e   :  { %1213 = dma.done.wait [#allocation9], 2048  }
 0x39f   :  { %1214 = vsyncadd [#allocation9], 4294965248 }
 0x3a0   :  { %855 = vsyncpa [#allocation3], 1 }
 0x3a1   :  { %856 = vsyncpa [#allocation6], 1 }
 0x3a2   :  { %857 = vsyncpa [#allocation4], 1 }
 0x3a3   :  { %858 = vsyncpa [#allocation9], 1 }

</bundles_post_ra>
